<compile_context>
chip_gen: v7x
topology: tpu7x:2x2x1
jax: 0.10.0
libtpu: 0.0.40
codegen_flags: <defaults>
</compile_context>

<pallas_src>
import functools

import jax
import jax.numpy as jnp
from jax.experimental import pallas as pl
from jax.experimental.pallas import tpu as pltpu


def _sigmoid_kernel(x_ref, o_ref, *, beta):
    # y = beta * sigmoid(x), slope == 1 (module default).
    x = x_ref[...].astype(jnp.float32)
    # exp on the EUP; approx reciprocal also on the EUP (single vrcp) instead
    # of a full-precision divide/Newton sequence on the VPU.
    y = beta * pl.reciprocal(1.0 + jnp.exp(-x), approx=True)
    o_ref[...] = y.astype(o_ref.dtype)


def _sigmoid_slope_kernel(x_ref, slope_ref, o_ref, *, beta):
    # y = beta * sigmoid(slope * x); slope_ref is (TM, 1), broadcasts over lanes.
    x = x_ref[...].astype(jnp.float32)
    s = slope_ref[...].astype(jnp.float32)
    z = s * x
    y = beta * pl.reciprocal(1.0 + jnp.exp(-z), approx=True)
    o_ref[...] = y.astype(o_ref.dtype)


def _round_up(a, b):
    return ((a + b - 1) // b) * b


def sigmoid2d(x, slope=None, beta=1.0, tile_rows=512, tile_cols=2048):
    """beta * sigmoid(slope * x) for x of shape (N, C, W).

    slope=None means the module's constant torch.ones(in_features, 1)
    (untrained), so the slope input path and multiply are dropped entirely.
    Otherwise slope must have shape (C, 1).
    """
    N, C, W = x.shape
    R = N * C
    x2 = x.reshape(R, W)  # contiguous collapse -> pure 2-D elementwise, no copy

    # ---- tile selection ---------------------------------------------------
    # Column tile: large multiple of 128 when W allows; otherwise the full
    # extent (always legal).  If W < 128 the store side is masked (vst.msk) —
    # unavoidable without padding, which would cost extra HBM traffic.
    tw = tile_cols if W >= tile_cols else W

    # Row tile: a multiple of 8, shrunk so the row axis has >= MIN_ROW_STEPS
    # grid steps whenever possible, so both of v7x's TensorCores get work.
    MIN_ROW_STEPS = 8
    if R <= 8:
        tm = R  # full-extent block (tiny case)
    else:
        tm = min(tile_rows, max(8, _round_up(pl.cdiv(R, MIN_ROW_STEPS), 8)))

    steps_r = pl.cdiv(R, tm)
    steps_c = pl.cdiv(W, tw)

    # If the row axis degenerated to a single step but the column axis has
    # many, lead with the column axis so the leading "parallel" dimension has
    # enough steps to shard across TensorCores.  (Slope refetches per inner
    # step in that case, but the slope block is tiny.)
    swap = (steps_r == 1) and (steps_c > 1)

    if swap:
        grid = (steps_c, steps_r)
        x_spec = pl.BlockSpec((tm, tw), lambda j, i: (i, j))
        s_spec = pl.BlockSpec((tm, 1), lambda j, i: (i, 0))
    else:
        grid = (steps_r, steps_c)
        x_spec = pl.BlockSpec((tm, tw), lambda i, j: (i, j))
        s_spec = pl.BlockSpec((tm, 1), lambda i, j: (i, 0))

    in_specs = [x_spec]
    args = [x2]
    if slope is None:
        kernel = functools.partial(_sigmoid_kernel, beta=float(beta))
    else:
        assert slope.shape == (C, 1)
        # One slope scalar per collapsed row (R * 4 bytes), tiled with x rows.
        slope2 = jnp.broadcast_to(slope[None, :, :], (N, C, 1)).reshape(R, 1)
        in_specs.append(s_spec)
        args.append(slope2)
        kernel = functools.partial(_sigmoid_slope_kernel, beta=float(beta))
        # NOTE: beta is baked statically; a changing beta retraces (known, OK).

    out2 = pl.pallas_call(
        kernel,
        out_shape=jax.ShapeDtypeStruct((R, W), x.dtype),
        grid_spec=pltpu.PrefetchScalarGridSpec(
            num_scalar_prefetch=0,
            grid=grid,
            in_specs=in_specs,
            out_specs=x_spec,
        ),
        compiler_params=pltpu.CompilerParams(
            dimension_semantics=("parallel", "parallel"),
            # ~17 MiB double-buffered footprint at 512x2048 f32: raise the
            # scoped limit explicitly so v5e's 16 MiB default doesn't spill;
            # well under physical VMEM on v5e/v6e (128 MiB) and v7x (64 MiB).
            vmem_limit_bytes=48 << 20,
        ),
    )(*args)

    return out2.reshape(N, C, W)


if __name__ == "__main__":
    key = jax.random.PRNGKey(0)

    N, C, W = 2, 4, 128            # batch, in_features, width
    beta = 1.0

    x = jax.random.normal(key, (N, C, W), dtype=jnp.float32)

    # Module semantics: slope is the constant torch.ones(in_features, 1)
    # (never trained), so the default slope=None fast path is exact.
    out = sigmoid2d(x, slope=None, beta=beta)
    out = jax.block_until_ready(out)

    ref = beta * jax.nn.sigmoid(jnp.ones((C, 1), jnp.float32) * x)
    assert out.shape == (N, C, W)
    # approx=True EUP reciprocal => allow ~1e-3 tolerance on an activation.
    assert jnp.allclose(out, ref, atol=2e-3, rtol=2e-3)

    # Also exercise the explicit-slope path (covers a user-modified self.slope).
    slope = jnp.ones((C, 1), dtype=jnp.float32)
    out2 = jax.block_until_ready(sigmoid2d(x, slope=slope, beta=beta))
    assert jnp.allclose(out2, ref, atol=2e-3, rtol=2e-3)

    print("KERNEL_OK")
</pallas_src>

<mosaic_0001>
module attributes {stable_mosaic.version = 11 : i64} {
  func.func @_sigmoid_kernel(%arg0: i32, %arg1: i32, %arg2: memref<8x128xf32, #tpu.memory_space<vmem>>, %arg3: memref<8x128xf32, #tpu.memory_space<vmem>>) attributes {dimension_semantics = [#tpu.dimension_semantics<parallel>, #tpu.dimension_semantics<parallel>], iteration_bounds = array<i64: 1, 1>, scalar_prefetch = 0 : i64, scratch_operands = 0 : i64, tpu.core_type = #tpu.core_type<tc>, window_params = [{transform_indices = @transform_0, window_bounds = array<i64: 8, 128>}, {transform_indices = @transform_1, window_bounds = array<i64: 8, 128>}]} {
    %c0 = arith.constant 0 : index
    %c0_0 = arith.constant 0 : index
    %0 = vector.load %arg2[%c0, %c0_0] : memref<8x128xf32, #tpu.memory_space<vmem>>, vector<8x128xf32>
    %cst = arith.constant 0.000000e+00 : f32
    %1 = vector.broadcast %cst : f32 to vector<8x128xf32>
    %2 = arith.subf %1, %0 : vector<8x128xf32>
    %3 = math.exp %2 : vector<8x128xf32>
    %cst_1 = arith.constant 1.000000e+00 : f32
    %4 = vector.broadcast %cst_1 : f32 to vector<8x128xf32>
    %5 = arith.addf %4, %3 : vector<8x128xf32>
    %6 = tpu.reciprocal %5 {approx = true} : vector<8x128xf32> -> vector<8x128xf32>
    %cst_2 = arith.constant 1.000000e+00 : f32
    %7 = vector.broadcast %cst_2 : f32 to vector<8x128xf32>
    %8 = arith.mulf %7, %6 : vector<8x128xf32>
    %c0_3 = arith.constant 0 : index
    %c0_4 = arith.constant 0 : index
    %9 = vector.load %arg3[%c0_3, %c0_4] : memref<8x128xf32, #tpu.memory_space<vmem>>, vector<8x128xf32>
    tpu.vector_store %arg3[%c0_3, %c0_4], %8 {strides = array<i32>} : memref<8x128xf32, #tpu.memory_space<vmem>>, vector<8x128xf32>,
    return
  }
  func.func @transform_0(%arg0: i32, %arg1: i32) -> (i32, i32) {
    %c0_i32 = arith.constant 0 : i32
    return %arg0, %arg1 : i32, i32
  }
  func.func @transform_1(%arg0: i32, %arg1: i32) -> (i32, i32) {
    %c0_i32 = arith.constant 0 : i32
    return %arg0, %arg1 : i32, i32
  }
}

</mosaic_0001>

<bundles_post_ra>
// kernel: tpu_custom_call.1
= control target key start
LH: loop header
LB: loop body
LE: loop exit
PB: predicated region body
PF: predicated region fallthrough
CT: control target
= control target key end

     0   :  { %6 = vsyncpa [#allocation3], 0  ;;  %s133_s0 = inlined_call_operand.hbm [shape: f32[8,128], index: 0, kind: input, shape index: {}]   ;;  %s134_s1 = inlined_call_operand.hbm [shape: f32[8,128], index: 1, kind: output, shape index: {}]  }
   0x1   :  { %7 = vsyncpa [#allocation4], 0  ;;  %s97_s6 = smov [#allocation2]   ;;  %s49_s10 = scalar_lea.hbm %s133_s0, 128 }
   0x2   :  { %s14_s7 = sshll.u32 %s97_s6, 4  ;;  %p50_p0 = scmp.ne.s32.totalorder %s133_s0, %s49_s10  ;;  %s15_s7 = int_to_ptr.vmem [resolvable:$true] %s14_s7 }
   0x3   :  { %p53_p1 = scmp.lt.u32.totalorder %s49_s10, %s133_s0 }
   0x5   :  { %p55_p2 = pnand %p53_p1, %p50_p0 }
   0x7   :  { %58 = shalt.err (!%p55_p2)
}
   0x8   :  { %s59_s15 = scalar_lea.vmem %s15_s7, 128  ;;  %p64_p4 = scmp.lt.s32.totalorder %s15_s7, %s15_s7 }
   0x9   :  { %p60_p3 = scmp.ne.s32.totalorder %s15_s7, %s59_s15  ;;  %p65_p5 = scmp.lt.s32.totalorder %s59_s15, %s59_s15 }
   0xb   :  { %p66_p6 = por %p65_p5, %p64_p4 }
   0xd   :  { %p67_p7 = pnand %p66_p6, %p60_p3 }
   0xf   :  { %70 = shalt.err (!%p67_p7)
}
  0x10   :  { %17 = dma.hbm_to_vmem [thread:$0]  %s133_s0, 128, %s15_s7, [#allocation3]  }
  0x11   :  { %93 = dma.done.wait [#allocation3], 128  }
  0x12   :  { %94 = vsyncadd [#allocation3], 4294967168  ;;  %v21_v0 = vld [vmem:[#allocation2] sm:$0xff]  ;;  %s98_s18 = smov [#allocation5]  }
  0x13   :  { %v22_v1 = vsub.f32 0.0, %v21_v0  ;;  %s34_s19 = sshll.u32 %s98_s18, 4  ;;  %s35_s19 = int_to_ptr.vmem [resolvable:$true] %s34_s19 }
  0x14   :  { %s71_s20 = scalar_lea.vmem %s35_s19, 128  ;;  %p76_p9 = scmp.lt.s32.totalorder %s35_s19, %s35_s19 }
  0x15   :  { %v23_v2 = vmul.f32 1.442695, %v22_v1  ;;  %p72_p8 = scmp.ne.s32.totalorder %s35_s19, %s71_s20  ;;  %p77_p10 = scmp.lt.s32.totalorder %s71_s20, %s71_s20 }
  0x17   :  { %45 = vpow2.f32 %v23_v2  ;;  %p78_p11 = por %p77_p10, %p76_p9 }
  0x19   :  { %p79_p12 = pnand %p78_p11, %p72_p8 }
  0x21   :  { %v46_v3 = vpop.eup %45 }
  0x22   :  { %v25_v4 = vadd.f32 1.0, %v46_v3 }
  0x24   :  { %47 = vrcp.f32 %v25_v4 }
  0x2e   :  { %v48_v5 = vpop.eup %47 }
  0x2f   :  { %27 = vst [vmem:[#allocation5] sm:$0xff] %v48_v5 }
  0x30   :  { %82 = shalt.err (!%p79_p12)
}
  0x31   :  { %s83_s22 = scalar_lea.hbm %s134_s1, 128 }
  0x32   :  { %p84_p13 = scmp.ne.s32.totalorder %s134_s1, %s83_s22  ;;  %p87_p0 = scmp.lt.u32.totalorder %s83_s22, %s134_s1 }
  0x34   :  { %p89_p1 = pnand %p87_p0, %p84_p13 }
  0x36   :  { %92 = shalt.err (!%p89_p1)
}
  0x37   :  { %37 = dma.vmem_to_hbm [thread:$0]  %s35_s19, 128, %s134_s1, [#allocation4]  }
  0x38   :  { %95 = dma.done.wait [#allocation4], 128  }
  0x39   :  { %96 = vsyncadd [#allocation4], 4294967168 }
  0x3a   :  { %41 = vsyncpa [#allocation3], 1 }
  0x3b   :  { %42 = vsyncpa [#allocation4], 1 }

</bundles_post_ra>
